<compile_context>
chip_gen: v6e
topology: v6e:2x2x1
jax: 0.10.0
libtpu: 0.0.40
codegen_flags: <defaults>
</compile_context>

<pallas_src>
import jax
import jax.numpy as jnp
from jax.experimental import pallas as pl
from jax.experimental.pallas import tpu as pltpu

# ---- model config (small, consistent with the module defaults) ----
N = 8            # number of nodes
F_IN = 16        # num_node_features
HID = 32         # hidden_channels
N_CLS = 8        # num_classes
NEG_SLOPE = 0.2  # GATConv LeakyReLU slope
NEG_INF = -1e30
LANES = 128      # lane width of the packed parameter slab

# row offsets inside the packed parameter slab (all 8-aligned so static slices
# never straddle an (8,128) tile boundary)
R_GCN1 = 0                 # (F_IN, HID)
R_GCN2 = R_GCN1 + F_IN     # (HID, HID)
R_GAT1 = R_GCN2 + HID      # (HID, HID + 2)   [W | W@a_dst | W@a_src]
R_GAT2 = R_GAT1 + HID      # (HID, HID + 2)
R_SAV = R_GAT2 + HID       # (HID, HID)
R_LIN = R_SAV + HID        # (HID, N_CLS)
W_ROWS = R_LIN + HID       # 176
R_BIAS = W_ROWS            # bias block starts here (8-aligned)
B_GCN1, B_GCN2, B_GAT1, B_GAT2, B_SAV, B_LIN = range(6)
P_ROWS = R_BIAS + 8        # 184 total rows


def gnn_kernel(x_ref, adj_ref, p_ref, out_ref):
    x = x_ref[...]       # (N, F_IN)
    adj = adj_ref[...]   # (N, N)
    mask = adj > 0.0

    def wslice(r0, rows, cols):
        return p_ref[r0:r0 + rows, 0:cols]

    def bias(i, cols):
        return p_ref[R_BIAS + i:R_BIAS + i + 1, 0:cols]

    # ---- GCN symmetric normalization:  A_hat[i,j] / sqrt(deg_i * deg_j) ----
    deg = jnp.sum(adj, axis=-1, keepdims=True)   # in-degree incl. self loops
    dinv = jax.lax.rsqrt(deg)                    # (N,1); deg >= 1 via self loops
    norm_adj = adj * dinv * jnp.transpose(dinv)  # (N,N)

    def gcn(h, w, b):
        hw = jnp.dot(h, w, preferred_element_type=jnp.float32)
        agg = jnp.dot(norm_adj, hw, preferred_element_type=jnp.float32) + b
        return jnp.maximum(agg, 0.0)             # F.relu

    h = gcn(x, wslice(R_GCN1, F_IN, HID), bias(B_GCN1, HID))
    h = gcn(h, wslice(R_GCN2, HID, HID), bias(B_GCN2, HID))

    # ---- GATConv (heads=1, concat=False), attention fused into one matmul ----
    def gat(h, w_aug, b):
        hwa = jnp.dot(h, w_aug, preferred_element_type=jnp.float32)  # (N, HID+2)
        hw = hwa[:, 0:HID]
        a_dst = hwa[:, HID:HID + 1]            # (N,1) = (h@W) @ att_dst
        a_src = hwa[:, HID + 1:HID + 2]        # (N,1) = (h@W) @ att_src
        e = a_dst + jnp.transpose(a_src)       # e[i,j] = a_dst[i] + a_src[j]
        e = jnp.where(e > 0.0, e, NEG_SLOPE * e)   # LeakyReLU(0.2)
        e = jnp.where(mask, e, NEG_INF)            # only real edges
        p = jnp.exp(e - jnp.max(e, axis=-1, keepdims=True))  # masked -> 0
        alpha = p * pl.reciprocal(jnp.sum(p, axis=-1, keepdims=True))
        out = jnp.dot(alpha, hw, preferred_element_type=jnp.float32) + b
        return jnp.maximum(out, 0.0)               # F.relu

    h = gat(h, wslice(R_GAT1, HID, HID + 2), bias(B_GAT1, HID))
    h = gat(h, wslice(R_GAT2, HID, HID + 2), bias(B_GAT2, HID))

    # ---- SpatialAttentionLayer (num_heads=1) ----
    # softmax over the key axis sums to 1, so einsum('bhk,bhv->bhv') == value
    # projection exactly; the q/k/softmax chain is dead compute and is skipped.
    h = jnp.dot(h, wslice(R_SAV, HID, HID), preferred_element_type=jnp.float32) \
        + bias(B_SAV, HID)

    # ---- final Linear ----
    out_ref[...] = jnp.dot(h, wslice(R_LIN, HID, N_CLS),
                           preferred_element_type=jnp.float32) + bias(B_LIN, N_CLS)


def pack_params(params):
    """Pack the 20 original parameter arrays into ONE lane-padded f32 slab."""
    (gcn_w1, gcn_b1, gcn_w2, gcn_b2,
     gat_w1, gat_as1, gat_ad1, gat_b1,
     gat_w2, gat_as2, gat_ad2, gat_b2,
     sa_wq, sa_bq, sa_wk, sa_bk, sa_wv, sa_bv,
     lin_w, lin_b) = params

    def pad_lanes(a):
        return jnp.pad(a.astype(jnp.float32), ((0, 0), (0, LANES - a.shape[1])))

    # fold attention vectors into the GAT node transform:
    # (h @ W) @ a == h @ (W @ a)   (f32 associativity error << 1e-4 tolerance)
    gat1_aug = jnp.concatenate([gat_w1, gat_w1 @ gat_ad1, gat_w1 @ gat_as1], axis=1)
    gat2_aug = jnp.concatenate([gat_w2, gat_w2 @ gat_ad2, gat_w2 @ gat_as2], axis=1)

    p_slab = jnp.concatenate(
        [pad_lanes(gcn_w1), pad_lanes(gcn_w2),
         pad_lanes(gat1_aug), pad_lanes(gat2_aug),
         pad_lanes(sa_wv), pad_lanes(lin_w),
         # bias block (rows R_BIAS .. R_BIAS+5, then 2 zero rows of padding)
         pad_lanes(gcn_b1), pad_lanes(gcn_b2), pad_lanes(gat_b1),
         pad_lanes(gat_b2), pad_lanes(sa_bv), pad_lanes(lin_b),
         jnp.zeros((2, LANES), jnp.float32)], axis=0)
    assert p_slab.shape == (P_ROWS, LANES)
    return p_slab


def configurable_gnn(x, adj, p_slab):
    vmem = pl.BlockSpec(memory_space=pltpu.MemorySpace.VMEM)
    return pl.pallas_call(
        gnn_kernel,
        out_shape=jax.ShapeDtypeStruct((N, N_CLS), jnp.float32),
        in_specs=[vmem, vmem, vmem],
        out_specs=vmem,
    )(x, adj, p_slab)


def reference(x, adj, params):
    # Pure-JAX reference mirroring the PyTorch forward semantics (full,
    # unfused math, including the complete SpatialAttention path).
    (gcn_w1, gcn_b1, gcn_w2, gcn_b2,
     gat_w1, gat_as1, gat_ad1, gat_b1,
     gat_w2, gat_as2, gat_ad2, gat_b2,
     sa_wq, sa_bq, sa_wk, sa_bk, sa_wv, sa_bv,
     lin_w, lin_b) = params
    mask = adj > 0.0
    deg = adj.sum(-1, keepdims=True)
    dinv = 1.0 / jnp.sqrt(deg)
    norm_adj = adj * dinv * dinv.T

    def gcn(h, w, b):
        return jax.nn.relu(norm_adj @ (h @ w) + b)

    def gat(h, w, a_s, a_d, b):
        hw = h @ w
        e = (hw @ a_d) + (hw @ a_s).T
        e = jnp.where(e > 0.0, e, NEG_SLOPE * e)
        e = jnp.where(mask, e, NEG_INF)
        p = jnp.exp(e - e.max(-1, keepdims=True))
        p = jnp.where(mask, p, 0.0)
        alpha = p / p.sum(-1, keepdims=True)
        return jax.nn.relu(alpha @ hw + b)

    h = gcn(x, gcn_w1, gcn_b1)
    h = gcn(h, gcn_w2, gcn_b2)
    h = gat(h, gat_w1, gat_as1, gat_ad1, gat_b1)
    h = gat(h, gat_w2, gat_as2, gat_ad2, gat_b2)
    q, k, v = h @ sa_wq + sa_bq, h @ sa_wk + sa_bk, h @ sa_wv + sa_bv
    score = k * q.sum(-1, keepdims=True) * (float(HID) ** -0.5)
    attn = jax.nn.softmax(score, axis=-1)
    h = attn.sum(-1, keepdims=True) * v
    return h @ lin_w + lin_b


if __name__ == "__main__":
    key = jax.random.PRNGKey(0)
    keys = jax.random.split(key, 32)
    ki = iter(keys)

    def rnd(shape, scale=0.3):
        return (scale * jax.random.normal(next(ki), shape)).astype(jnp.float32)

    # node features
    x = rnd((N, F_IN), scale=1.0)

    # deterministic small graph: undirected ring over N nodes
    src = jnp.concatenate([jnp.arange(N), (jnp.arange(N) + 1) % N])
    dst = jnp.concatenate([(jnp.arange(N) + 1) % N, jnp.arange(N)])
    adj = jnp.zeros((N, N), jnp.float32).at[dst, src].set(1.0)
    adj = adj + jnp.eye(N, dtype=jnp.float32)   # self loops (GCN/GAT default)

    params = (
        # GCN layer 1 / 2
        rnd((F_IN, HID)), rnd((1, HID)), rnd((HID, HID)), rnd((1, HID)),
        # GAT layer 1: W, att_src, att_dst, bias
        rnd((HID, HID)), rnd((HID, 1)), rnd((HID, 1)), rnd((1, HID)),
        # GAT layer 2
        rnd((HID, HID)), rnd((HID, 1)), rnd((HID, 1)), rnd((1, HID)),
        # SpatialAttention: Wq,bq, Wk,bk, Wv,bv
        rnd((HID, HID)), rnd((1, HID)), rnd((HID, HID)), rnd((1, HID)),
        rnd((HID, HID)), rnd((1, HID)),
        # final Linear
        rnd((HID, N_CLS)), rnd((1, N_CLS)),
    )

    p_slab = pack_params(params)

    out = configurable_gnn(x, adj, p_slab)
    out = jax.block_until_ready(out)

    ref = reference(x, adj, params)
    assert out.shape == (N, N_CLS)
    assert jnp.allclose(out, ref, atol=1e-4, rtol=1e-4), "mismatch vs reference"

    print("KERNEL_OK")
</pallas_src>

<mosaic_0001>
module attributes {stable_mosaic.version = 11 : i64} {
  func.func @gnn_kernel(%arg0: memref<8x16xf32, #tpu.memory_space<vmem>>, %arg1: memref<8x8xf32, #tpu.memory_space<vmem>>, %arg2: memref<184x128xf32, #tpu.memory_space<vmem>>, %arg3: memref<8x8xf32, #tpu.memory_space<vmem>>) attributes {dimension_semantics = [], scalar_prefetch = 0 : i64, scratch_operands = 0 : i64, tpu.core_type = #tpu.core_type<tc>} {
    %c0 = arith.constant 0 : index
    %c0_0 = arith.constant 0 : index
    %0 = vector.load %arg0[%c0, %c0_0] : memref<8x16xf32, #tpu.memory_space<vmem>>, vector<8x16xf32>
    %c0_1 = arith.constant 0 : index
    %c0_2 = arith.constant 0 : index
    %1 = vector.load %arg1[%c0_1, %c0_2] : memref<8x8xf32, #tpu.memory_space<vmem>>, vector<8x8xf32>
    %cst = arith.constant 0.000000e+00 : f32
    %2 = vector.broadcast %cst : f32 to vector<8x8xf32>
    %3 = arith.cmpf ogt, %1, %2 : vector<8x8xf32>
    %cst_3 = arith.constant dense<0.000000e+00> : vector<8xf32>
    %4 = vector.multi_reduction <add>, %1, %cst_3 [1] : vector<8x8xf32> to vector<8xf32>
    %5 = vector.shape_cast %4 : vector<8xf32> to vector<8x1xf32>
    %6 = math.rsqrt %5 : vector<8x1xf32>
    %7 = vector.broadcast %6 : vector<8x1xf32> to vector<8x8xf32>
    %8 = arith.mulf %1, %7 : vector<8x8xf32>
    %9 = tpu.transpose %6, [1, 0] : vector<8x1xf32> -> vector<1x8xf32>
    %10 = vector.broadcast %9 : vector<1x8xf32> to vector<8x8xf32>
    %11 = arith.mulf %8, %10 : vector<8x8xf32>
    %c0_4 = arith.constant 0 : index
    %c0_5 = arith.constant 0 : index
    %12 = vector.load %arg2[%c0_4, %c0_5] : memref<184x128xf32, #tpu.memory_space<vmem>>, vector<16x32xf32>
    %c176 = arith.constant 176 : index
    %c0_6 = arith.constant 0 : index
    %13 = vector.load %arg2[%c176, %c0_6] : memref<184x128xf32, #tpu.memory_space<vmem>>, vector<1x32xf32>
    %cst_7 = arith.constant dense<0.000000e+00> : vector<8x32xf32>
    %14 = tpu.matmul %0, %12, %cst_7 {dimension_numbers = #tpu.dot_dimension_numbers<[1], [0], [0], [1], [0, 0, 1, 1], [], []>} : vector<8x16xf32>, vector<16x32xf32>, vector<8x32xf32> -> vector<8x32xf32>
    %cst_8 = arith.constant dense<0.000000e+00> : vector<8x32xf32>
    %15 = tpu.matmul %11, %14, %cst_8 {dimension_numbers = #tpu.dot_dimension_numbers<[1], [0], [0], [1], [0, 0, 1, 1], [], []>} : vector<8x8xf32>, vector<8x32xf32>, vector<8x32xf32> -> vector<8x32xf32>
    %16 = vector.broadcast %13 : vector<1x32xf32> to vector<8x32xf32>
    %17 = arith.addf %15, %16 : vector<8x32xf32>
    %cst_9 = arith.constant 0.000000e+00 : f32
    %18 = vector.broadcast %cst_9 : f32 to vector<8x32xf32>
    %19 = arith.maximumf %17, %18 : vector<8x32xf32>
    %c16 = arith.constant 16 : index
    %c0_10 = arith.constant 0 : index
    %20 = vector.load %arg2[%c16, %c0_10] : memref<184x128xf32, #tpu.memory_space<vmem>>, vector<32x32xf32>
    %c177 = arith.constant 177 : index
    %c0_11 = arith.constant 0 : index
    %21 = vector.load %arg2[%c177, %c0_11] : memref<184x128xf32, #tpu.memory_space<vmem>>, vector<1x32xf32>
    %cst_12 = arith.constant dense<0.000000e+00> : vector<8x32xf32>
    %22 = tpu.matmul %19, %20, %cst_12 {dimension_numbers = #tpu.dot_dimension_numbers<[1], [0], [0], [1], [0, 0, 1, 1], [], []>} : vector<8x32xf32>, vector<32x32xf32>, vector<8x32xf32> -> vector<8x32xf32>
    %cst_13 = arith.constant dense<0.000000e+00> : vector<8x32xf32>
    %23 = tpu.matmul %11, %22, %cst_13 {dimension_numbers = #tpu.dot_dimension_numbers<[1], [0], [0], [1], [0, 0, 1, 1], [], []>} : vector<8x8xf32>, vector<8x32xf32>, vector<8x32xf32> -> vector<8x32xf32>
    %24 = vector.broadcast %21 : vector<1x32xf32> to vector<8x32xf32>
    %25 = arith.addf %23, %24 : vector<8x32xf32>
    %cst_14 = arith.constant 0.000000e+00 : f32
    %26 = vector.broadcast %cst_14 : f32 to vector<8x32xf32>
    %27 = arith.maximumf %25, %26 : vector<8x32xf32>
    %c48 = arith.constant 48 : index
    %c0_15 = arith.constant 0 : index
    %28 = vector.load %arg2[%c48, %c0_15] : memref<184x128xf32, #tpu.memory_space<vmem>>, vector<32x34xf32>
    %c178 = arith.constant 178 : index
    %c0_16 = arith.constant 0 : index
    %29 = vector.load %arg2[%c178, %c0_16] : memref<184x128xf32, #tpu.memory_space<vmem>>, vector<1x32xf32>
    %cst_17 = arith.constant dense<0.000000e+00> : vector<8x34xf32>
    %30 = tpu.matmul %27, %28, %cst_17 {dimension_numbers = #tpu.dot_dimension_numbers<[1], [0], [0], [1], [0, 0, 1, 1], [], []>} : vector<8x32xf32>, vector<32x34xf32>, vector<8x34xf32> -> vector<8x34xf32>
    %31 = vector.extract_strided_slice %30 {offsets = [0, 0], sizes = [8, 32], strides = [1, 1]} : vector<8x34xf32> to vector<8x32xf32>
    %32 = vector.extract_strided_slice %30 {offsets = [0, 32], sizes = [8, 1], strides = [1, 1]} : vector<8x34xf32> to vector<8x1xf32>
    %33 = vector.extract_strided_slice %30 {offsets = [0, 33], sizes = [8, 1], strides = [1, 1]} : vector<8x34xf32> to vector<8x1xf32>
    %34 = tpu.transpose %33, [1, 0] : vector<8x1xf32> -> vector<1x8xf32>
    %35 = vector.broadcast %32 : vector<8x1xf32> to vector<8x8xf32>
    %36 = vector.broadcast %34 : vector<1x8xf32> to vector<8x8xf32>
    %37 = arith.addf %35, %36 : vector<8x8xf32>
    %cst_18 = arith.constant 0.000000e+00 : f32
    %38 = vector.broadcast %cst_18 : f32 to vector<8x8xf32>
    %39 = arith.cmpf ogt, %37, %38 : vector<8x8xf32>
    %cst_19 = arith.constant 2.000000e-01 : f32
    %40 = vector.broadcast %cst_19 : f32 to vector<8x8xf32>
    %41 = arith.mulf %40, %37 : vector<8x8xf32>
    %42 = arith.select %39, %37, %41 : vector<8x8xi1>, vector<8x8xf32>
    %cst_20 = arith.constant -1.000000e+30 : f32
    %43 = vector.broadcast %cst_20 : f32 to vector<8x8xf32>
    %44 = arith.select %3, %42, %43 : vector<8x8xi1>, vector<8x8xf32>
    %cst_21 = arith.constant dense<0xFF800000> : vector<8xf32>
    %45 = vector.multi_reduction <maximumf>, %44, %cst_21 [1] : vector<8x8xf32> to vector<8xf32>
    %46 = vector.shape_cast %45 : vector<8xf32> to vector<8x1xf32>
    %47 = vector.broadcast %46 : vector<8x1xf32> to vector<8x8xf32>
    %48 = arith.subf %44, %47 : vector<8x8xf32>
    %49 = math.exp %48 : vector<8x8xf32>
    %cst_22 = arith.constant dense<0.000000e+00> : vector<8xf32>
    %50 = vector.multi_reduction <add>, %49, %cst_22 [1] : vector<8x8xf32> to vector<8xf32>
    %51 = vector.shape_cast %50 : vector<8xf32> to vector<8x1xf32>
    %52 = tpu.reciprocal %51 : vector<8x1xf32> -> vector<8x1xf32>
    %53 = vector.broadcast %52 : vector<8x1xf32> to vector<8x8xf32>
    %54 = arith.mulf %49, %53 : vector<8x8xf32>
    %cst_23 = arith.constant dense<0.000000e+00> : vector<8x32xf32>
    %55 = tpu.matmul %54, %31, %cst_23 {dimension_numbers = #tpu.dot_dimension_numbers<[1], [0], [0], [1], [0, 0, 1, 1], [], []>} : vector<8x8xf32>, vector<8x32xf32>, vector<8x32xf32> -> vector<8x32xf32>
    %56 = vector.broadcast %29 : vector<1x32xf32> to vector<8x32xf32>
    %57 = arith.addf %55, %56 : vector<8x32xf32>
    %cst_24 = arith.constant 0.000000e+00 : f32
    %58 = vector.broadcast %cst_24 : f32 to vector<8x32xf32>
    %59 = arith.maximumf %57, %58 : vector<8x32xf32>
    %c80 = arith.constant 80 : index
    %c0_25 = arith.constant 0 : index
    %60 = vector.load %arg2[%c80, %c0_25] : memref<184x128xf32, #tpu.memory_space<vmem>>, vector<32x34xf32>
    %c179 = arith.constant 179 : index
    %c0_26 = arith.constant 0 : index
    %61 = vector.load %arg2[%c179, %c0_26] : memref<184x128xf32, #tpu.memory_space<vmem>>, vector<1x32xf32>
    %cst_27 = arith.constant dense<0.000000e+00> : vector<8x34xf32>
    %62 = tpu.matmul %59, %60, %cst_27 {dimension_numbers = #tpu.dot_dimension_numbers<[1], [0], [0], [1], [0, 0, 1, 1], [], []>} : vector<8x32xf32>, vector<32x34xf32>, vector<8x34xf32> -> vector<8x34xf32>
    %63 = vector.extract_strided_slice %62 {offsets = [0, 0], sizes = [8, 32], strides = [1, 1]} : vector<8x34xf32> to vector<8x32xf32>
    %64 = vector.extract_strided_slice %62 {offsets = [0, 32], sizes = [8, 1], strides = [1, 1]} : vector<8x34xf32> to vector<8x1xf32>
    %65 = vector.extract_strided_slice %62 {offsets = [0, 33], sizes = [8, 1], strides = [1, 1]} : vector<8x34xf32> to vector<8x1xf32>
    %66 = tpu.transpose %65, [1, 0] : vector<8x1xf32> -> vector<1x8xf32>
    %67 = vector.broadcast %64 : vector<8x1xf32> to vector<8x8xf32>
    %68 = vector.broadcast %66 : vector<1x8xf32> to vector<8x8xf32>
    %69 = arith.addf %67, %68 : vector<8x8xf32>
    %cst_28 = arith.constant 0.000000e+00 : f32
    %70 = vector.broadcast %cst_28 : f32 to vector<8x8xf32>
    %71 = arith.cmpf ogt, %69, %70 : vector<8x8xf32>
    %cst_29 = arith.constant 2.000000e-01 : f32
    %72 = vector.broadcast %cst_29 : f32 to vector<8x8xf32>
    %73 = arith.mulf %72, %69 : vector<8x8xf32>
    %74 = arith.select %71, %69, %73 : vector<8x8xi1>, vector<8x8xf32>
    %cst_30 = arith.constant -1.000000e+30 : f32
    %75 = vector.broadcast %cst_30 : f32 to vector<8x8xf32>
    %76 = arith.select %3, %74, %75 : vector<8x8xi1>, vector<8x8xf32>
    %cst_31 = arith.constant dense<0xFF800000> : vector<8xf32>
    %77 = vector.multi_reduction <maximumf>, %76, %cst_31 [1] : vector<8x8xf32> to vector<8xf32>
    %78 = vector.shape_cast %77 : vector<8xf32> to vector<8x1xf32>
    %79 = vector.broadcast %78 : vector<8x1xf32> to vector<8x8xf32>
    %80 = arith.subf %76, %79 : vector<8x8xf32>
    %81 = math.exp %80 : vector<8x8xf32>
    %cst_32 = arith.constant dense<0.000000e+00> : vector<8xf32>
    %82 = vector.multi_reduction <add>, %81, %cst_32 [1] : vector<8x8xf32> to vector<8xf32>
    %83 = vector.shape_cast %82 : vector<8xf32> to vector<8x1xf32>
    %84 = tpu.reciprocal %83 : vector<8x1xf32> -> vector<8x1xf32>
    %85 = vector.broadcast %84 : vector<8x1xf32> to vector<8x8xf32>
    %86 = arith.mulf %81, %85 : vector<8x8xf32>
    %cst_33 = arith.constant dense<0.000000e+00> : vector<8x32xf32>
    %87 = tpu.matmul %86, %63, %cst_33 {dimension_numbers = #tpu.dot_dimension_numbers<[1], [0], [0], [1], [0, 0, 1, 1], [], []>} : vector<8x8xf32>, vector<8x32xf32>, vector<8x32xf32> -> vector<8x32xf32>
    %88 = vector.broadcast %61 : vector<1x32xf32> to vector<8x32xf32>
    %89 = arith.addf %87, %88 : vector<8x32xf32>
    %cst_34 = arith.constant 0.000000e+00 : f32
    %90 = vector.broadcast %cst_34 : f32 to vector<8x32xf32>
    %91 = arith.maximumf %89, %90 : vector<8x32xf32>
    %c112 = arith.constant 112 : index
    %c0_35 = arith.constant 0 : index
    %92 = vector.load %arg2[%c112, %c0_35] : memref<184x128xf32, #tpu.memory_space<vmem>>, vector<32x32xf32>
    %cst_36 = arith.constant dense<0.000000e+00> : vector<8x32xf32>
    %93 = tpu.matmul %91, %92, %cst_36 {dimension_numbers = #tpu.dot_dimension_numbers<[1], [0], [0], [1], [0, 0, 1, 1], [], []>} : vector<8x32xf32>, vector<32x32xf32>, vector<8x32xf32> -> vector<8x32xf32>
    %c180 = arith.constant 180 : index
    %c0_37 = arith.constant 0 : index
    %94 = vector.load %arg2[%c180, %c0_37] : memref<184x128xf32, #tpu.memory_space<vmem>>, vector<1x32xf32>
    %95 = vector.broadcast %94 : vector<1x32xf32> to vector<8x32xf32>
    %96 = arith.addf %93, %95 : vector<8x32xf32>
    %c144 = arith.constant 144 : index
    %c0_38 = arith.constant 0 : index
    %97 = vector.load %arg2[%c144, %c0_38] : memref<184x128xf32, #tpu.memory_space<vmem>>, vector<32x8xf32>
    %cst_39 = arith.constant dense<0.000000e+00> : vector<8x8xf32>
    %98 = tpu.matmul %96, %97, %cst_39 {dimension_numbers = #tpu.dot_dimension_numbers<[1], [0], [0], [1], [0, 0, 1, 1], [], []>} : vector<8x32xf32>, vector<32x8xf32>, vector<8x8xf32> -> vector<8x8xf32>
    %c181 = arith.constant 181 : index
    %c0_40 = arith.constant 0 : index
    %99 = vector.load %arg2[%c181, %c0_40] : memref<184x128xf32, #tpu.memory_space<vmem>>, vector<1x8xf32>
    %100 = vector.broadcast %99 : vector<1x8xf32> to vector<8x8xf32>
    %101 = arith.addf %98, %100 : vector<8x8xf32>
    %c0_41 = arith.constant 0 : index
    %c0_42 = arith.constant 0 : index
    %102 = vector.load %arg3[%c0_41, %c0_42] : memref<8x8xf32, #tpu.memory_space<vmem>>, vector<8x8xf32>
    tpu.vector_store %arg3[%c0_41, %c0_42], %101 {strides = array<i32>} : memref<8x8xf32, #tpu.memory_space<vmem>>, vector<8x8xf32>,
    return
  }
}

</mosaic_0001>

<bundles_post_ra>
// kernel: tpu_custom_call.1
= control target key start
LH: loop header
LB: loop body
LE: loop exit
PB: predicated region body
PF: predicated region fallthrough
CT: control target
= control target key end

     0   :  { %8 = vsyncpa [#allocation3], 0  ;;  %s1381_s0 = inlined_call_operand.hbm [shape: f32[8,16], index: 0, kind: input, shape index: {}]   ;;  %s1382_s1 = inlined_call_operand.hbm [shape: f32[8,8], index: 1, kind: input, shape index: {}]   ;;  %s1383_s2 = inlined_call_operand.hbm [shape: f32[184,128], index: 2, kind: input, shape index: {}]   ;;  %s1384_s3 = inlined_call_operand.hbm [shape: f32[8,8], index: 3, kind: output, shape index: {}]  }
   0x1   :  { %9 = vsyncpa [#allocation6], 0 }
   0x2   :  { %10 = vsyncpa [#allocation4], 0  ;;  %s1262_s12 = smov [#allocation5]   ;;  %s1263_s14 = smov [#allocation2]  }
   0x3   :  { %s27_s13 = sshll.u32 %s1262_s12, 4  ;;  %s17_s15 = sshll.u32 %s1263_s14, 4  ;;  %s28_s13 = int_to_ptr.vmem [resolvable:$true] %s27_s13  ;;  %s18_s15 = int_to_ptr.vmem [resolvable:$true] %s17_s15 }
   0x4   :  { %s1184_s16 = scalar_lea.vmem %s28_s13, 128  ;;  %p1189_p1 = scmp.lt.s32.totalorder %s28_s13, %s28_s13 }
   0x5   :  { %p1185_p0 = scmp.ne.s32.totalorder %s28_s13, %s1184_s16  ;;  %p1190_p2 = scmp.lt.s32.totalorder %s1184_s16, %s1184_s16 }
   0x7   :  { %p1191_p3 = por %p1190_p2, %p1189_p1 }
   0x9   :  { %p1192_p4 = pnand %p1191_p3, %p1185_p0 }
   0xb   :  { %1195 = shalt.err (!%p1192_p4)
}
   0xc   :  { %30 = dma.hbm_to_vmem [thread:$0]  %s1382_s1, 128, %s28_s13, [#allocation6]  }
   0xd   :  { %s1204_s19 = scalar_lea.vmem %s18_s15, 128  ;;  %p1209_p6 = scmp.lt.s32.totalorder %s18_s15, %s18_s15 }
   0xe   :  { %p1205_p5 = scmp.ne.s32.totalorder %s18_s15, %s1204_s19  ;;  %p1210_p7 = scmp.lt.s32.totalorder %s1204_s19, %s1204_s19 }
  0x10   :  { %p1211_p8 = por %p1210_p7, %p1209_p6 }
  0x12   :  { %p1212_p9 = pnand %p1211_p8, %p1205_p5 }
  0x14   :  { %1215 = shalt.err (!%p1212_p9)
}
  0x15   :  { %20 = dma.hbm_to_vmem [thread:$0]  %s1381_s0, 128, %s18_s15, [#allocation3]  }
  0x16   :  { %s1264_s22 = smov [#allocation7]  }
  0x17   :  { %s36_s23 = sshll.u32 %s1264_s22, 4  ;;  %s37_s23 = int_to_ptr.vmem [resolvable:$true] %s36_s23 }
  0x18   :  { %s1224_s24 = scalar_lea.vmem %s37_s23, 2944  ;;  %p1229_p11 = scmp.lt.s32.totalorder %s37_s23, %s37_s23 }
  0x19   :  { %p1225_p10 = scmp.ne.s32.totalorder %s37_s23, %s1224_s24  ;;  %p1230_p12 = scmp.lt.s32.totalorder %s1224_s24, %s1224_s24 }
  0x1b   :  { %p1231_p13 = por %p1230_p12, %p1229_p11 }
  0x1d   :  { %p1232_p0 = pnand %p1231_p13, %p1225_p10 }
  0x1f   :  { %1235 = shalt.err (!%p1232_p0)
}
  0x20   :  { %s1265_s1 = smov 128   ;;  %s1266_s25 = smov 8  }
  0x21   :  { %42 = dma.hbm_to_vmem [thread:$0]  %s1383_s2, 2944, %s37_s23, [#allocation6], %s1265_s1, %s1265_s1, %s1266_s25  }
  0x22   :  { %1256 = dma.done.wait [#allocation3], 128  }
  0x23   :  { %1257 = vsyncadd [#allocation3], 4294967168 }
  0x24   :  { %1258 = dma.done.wait [#allocation6], 3072  }
  0x25   :  { %1259 = vsyncadd [#allocation6], 4294964224  ;;  %v1267_v0 = vmov 0.0   ;;  %vm1268_vm0 = vmmov 0   ;;  %vm55_vm1 = vcmask 64512   ;;  %v1307_v1 = vld [vmem:[#allocation5] sm:$0xff]  ;;  %v93_v10 = vlaneseq }
  0x26   :  { %1072 = vmatprep.subr.mxu0 %v1267_v0  ;;  %1076 = vmatprep.mubr.msk.f32.mxu0 %vm1268_vm0, %v1267_v0  ;;  %v99_v2 = vld [vmem:[#allocation7 + $0x8] sm:$0xff]  ;;  %v98_v3 = vld [vmem:[#allocation7] sm:$0xff]  ;;  %v56_v4 = vsel %vm55_vm1, %v1307_v1, 0.0  ;;  %v52_v5 = vld [vmem:[#allocation2] sm:$0xff]  ;;  %vm101_vm2 = vcmask 130048   ;;  %vm258_vm3 = vcmask 261120  }
  0x27   :  { %1079 = vmatprep.subr.mxu1 %v1267_v0  ;;  %1081 = vmatprep.mubr.msk.f32.mxu1 %vm1268_vm0, %v1267_v0  ;;  %v94_v11 = vshrl.u32 %v93_v10, 7  ;;  %v256_v17 = vld [vmem:[#allocation7 + $0x28] sm:$0xff]  ;;  %v255_v18 = vld [vmem:[#allocation7 + $0x20] sm:$0xff]  ;;  %v254_v19 = vld [vmem:[#allocation7 + $0x18] sm:$0xff]  ;;  %v1269_v37 = vmov 32   ;;  %s1270_s0 = smov 95  }
  0x28   :  { %1073 = vmatpush3.msra.mxu0 %v99_v2  ;;  %57 = vadd.xlane.f32.xlu0 %v56_v4  ;;  %v253_v20 = vld [vmem:[#allocation7 + $0x10] sm:$0xff]  ;;  %v410_v27 = vld [vmem:[#allocation7 + $0x48] sm:$0xff]  ;;  %v409_v29 = vld [vmem:[#allocation7 + $0x40] sm:$0xff]  ;;  %vm54_vm4 = vcmp.gt.f32.partialorder %v1307_v1, 0.0  ;;  %s1271_s2 = smov [#allocation8]  }
  0x29   :  { %1074 = vmatprep.subr.mxu0 %v1267_v0  ;;  %v1316_v12 = vsub.s32 0, %v94_v11  ;;  %v1021_v21 = vld [vmem:[#allocation7 + $0xb0] ss:$0 sm:$0xff]  ;;  %v408_v30 = vld [vmem:[#allocation7 + $0x38] sm:$0xff]  ;;  %v1024_v32 = vld [vmem:[#allocation7 + $0xb1] ss:$0 sm:$0xff]  ;;  %1164 = vset.pattern.permute.xlu1 %v1269_v37 }
  0x2a   :  { %1075 = vmatpush3.msra.mxu0 %v98_v3  ;;  %v407_v31 = vld [vmem:[#allocation7 + $0x30] sm:$0xff]  ;;  %v626_v57 = vld [vmem:[#allocation7 + $0x68] sm:$0xff]  ;;  %v625_v58 = vld [vmem:[#allocation7 + $0x60] sm:$0xff]  ;;  %s1010_s28 = sshll.u32 %s1271_s2, 4  ;;  %s1011_s28 = int_to_ptr.vmem [resolvable:$true] %s1010_s28 }
  0x2b   :  { %1077 = vmatmul.mubr.msk.f32.vlgmr.msra.gmra.mxu0 %vm101_vm2, %v52_v5  ;;  %1095 = vmatprep.subr.mxu0 %v1267_v0  ;;  %v624_v59 = vld [vmem:[#allocation7 + $0x58] sm:$0xff]  ;;  %v623_v60 = vld [vmem:[#allocation7 + $0x50] sm:$0xff]  ;;  %s1236_s29 = scalar_lea.vmem %s1011_s28, 128  ;;  %p1241_p2 = scmp.lt.s32.totalorder %s1011_s28, %s1011_s28 }
  0x2c   :  { %1097 = vmatprep.mubr.msk.f32.mxu0 %vm1268_vm0, %v1267_v0  ;;  %v1027_v61 = vld [vmem:[#allocation7 + $0xb2] ss:$0 sm:$0xff]  ;;  %p1237_p1 = scmp.ne.s32.totalorder %s1011_s28, %s1236_s29  ;;  %p1242_p3 = scmp.lt.s32.totalorder %s1236_s29, %s1236_s29 }
  0x2e   :  { %p1243_p4 = por %p1242_p3, %p1241_p2 }
  0x30   :  { %p1244_p5 = pnand %p1243_p4, %p1237_p1 }
  0xb1   :  { %v58_v6 = vpop.xlane.xlu0 %57 }
  0xb2   :  { %1166 = vrsqrt.f32 %v58_v6 }
  0xbf   :  { %v1167_v7 = vpop.eup %1166 }
  0xc0   :  { %61 = vxpose.xlu0.b32.start.end [1/1] (short) (narrow) %v1167_v7, 8  ;;  %v60_v14 = vmul.f32 %v1167_v7, %v1307_v1  ;;  %v841_v1 = vld [vmem:[#allocation7 + $0x80] sm:$0xff] }
  0xe9   :  { %1165 = vset.pattern.permute.xlu0 %v1269_v37 }
  0xeb   :  { %v171_v8 = vpop.f32.mrf.mxu0 }
  0xec   :  { %1080 = vmatpush3.msra.mxu1 %v171_v8 }
  0xed   :  { %v1078_v9 = vpop.f32.mrf.mxu0  ;;  %1084 = vmatprep.subr.mxu1 %v1267_v0 }
 0x13c   :  { %v77_v13 = vpop.trf.xlu0 }
 0x13d   :  { %v96_v15 = vrot.slane %v77_v13, %v1316_v12 }
 0x13f   :  { %v97_v16 = vmul.f32 %v96_v15, %v60_v14 }
 0x141   :  { %1082 = vmatmul.mubr.msk.f32.vlgmr.msra.gmra.mxu1 %vm55_vm1, %v97_v16 }
 0x142   :  { %1085 = vmatpush3.msra.mxu1 %v256_v17  ;;  %1092 = vmatprep.mubr.msk.f32.mxu1 %vm1268_vm0, %v1267_v0 }
 0x143   :  { %1086 = vmatprep.subr.mxu1 %v1267_v0 }
 0x144   :  { %1087 = vmatpush3.msra.mxu1 %v255_v18 }
 0x145   :  { %1088 = vmatprep.subr.mxu1 %v1267_v0 }
 0x146   :  { %1089 = vmatpush3.msra.mxu1 %v254_v19 }
 0x147   :  { %1090 = vmatprep.subr.mxu1 %v1267_v0 }
 0x148   :  { %1091 = vmatpush3.msra.mxu1 %v253_v20 }
 0x149   :  { %1111 = vmatprep.subr.mxu1 %v1267_v0 }
 0x201   :  { %v248_v22 = vpop.f32.mrf.mxu1 }
 0x202   :  { %v249_v23 = vadd.f32 %v1021_v21, %v248_v22 }
 0x203   :  { %v1083_v24 = vpop.f32.mrf.mxu1 }
 0x204   :  { %v252_v25 = vmax.f32 %v249_v23, 0.0  ;;  %v842_v23 = vld [vmem:[#allocation7 + $0x88] sm:$0xff]  ;;  %v840_v24 = vld [vmem:[#allocation7 + $0x78] sm:$0xff] }
 0x206   :  { %1093 = vmatmul.mubr.msk.f32.vlgmr.msra.gmra.mxu1 %vm258_vm3, %v252_v25  ;;  %v839_v25 = vld [vmem:[#allocation7 + $0x70] sm:$0xff] }
 0x207   :  { %1113 = vmatprep.mubr.msk.f32.mxu1 %vm1268_vm0, %v1267_v0 }
 0x2c6   :  { %v328_v26 = vpop.f32.mrf.mxu1 }
 0x2c7   :  { %1096 = vmatpush3.msra.mxu0 %v328_v26  ;;  %v924_v26 = vld [vmem:[#allocation7 + $0xa8] sm:$0xff] }
 0x2c8   :  { %v1094_v28 = vpop.f32.mrf.mxu1  ;;  %1098 = vmatmul.mubr.msk.f32.vlgmr.msra.gmra.mxu0 %vm55_vm1, %v97_v16  ;;  %1100 = vmatprep.subr.mxu0 %v1267_v0 }
 0x2c9   :  { %1101 = vmatpush3.msra.mxu0 %v410_v27  ;;  %1108 = vmatprep.mubr.msk.f32.mxu0 %vm1268_vm0, %v1267_v0  ;;  %v923_v27 = vld [vmem:[#allocation7 + $0xa0] sm:$0xff]  ;;  %v1030_v28 = vld [vmem:[#allocation7 + $0xb3] ss:$0 sm:$0xff] }
 0x2ca   :  { %1102 = vmatprep.subr.mxu0 %v1267_v0 }
 0x2cb   :  { %1103 = vmatpush3.msra.mxu0 %v409_v29 }
 0x2cc   :  { %1104 = vmatprep.subr.mxu0 %v1267_v0 }
 0x2cd   :  { %1105 = vmatpush3.msra.mxu0 %v408_v30 }
 0x2ce   :  { %1106 = vmatprep.subr.mxu0 %v1267_v0 }
 0x2cf   :  { %1107 = vmatpush3.msra.mxu0 %v407_v31 }
 0x2d0   :  { %1127 = vmatprep.subr.mxu0 %v1267_v0 }
 0x388   :  { %v402_v33 = vpop.f32.mrf.mxu0 }
 0x389   :  { %v403_v34 = vadd.f32 %v1024_v32, %v402_v33  ;;  %v922_v33 = vld [vmem:[#allocation7 + $0x98] sm:$0xff] }
 0x38a   :  { %v1099_v35 = vpop.f32.mrf.mxu0 }
 0x38b   :  { %v406_v36 = vmax.f32 %v403_v34, 0.0  ;;  %v921_v34 = vld [vmem:[#allocation7 + $0x90] sm:$0xff] }
 0x38c   :  { %v1032_v35 = vld [vmem:[#allocation7 + $0xb4] ss:$0 sm:$0xff] }
 0x38d   :  { %1109 = vmatmul.mubr.msk.f32.vlgmr.msra.gmra.mxu0 %vm258_vm3, %v406_v36 }
 0x38e   :  { %1129 = vmatprep.mubr.msk.f32.mxu0 %vm1268_vm0, %v1267_v0 }
 0x44d   :  { %v481_v38 = vpop.f32.mrf.mxu0 }
 0x44e   :  { %486 = vrot.lane.b32.xlu1 %v481_v38, %s1270_s0  ;;  %1112 = vmatpush3.msra.mxu1 %v481_v38 }
 0x44f   :  { %v1110_v39 = vpop.f32.mrf.mxu0  ;;  %1116 = vmatprep.subr.mxu1 %v1267_v0 }
 0x450   :  { %v1034_v39 = vld [vmem:[#allocation7 + $0xb5] ss:$0 sm:$0xff] }
 0x452   :  { %522 = vperm.xlu1 %1164, %v481_v38  }
 0x4c0   :  { %v487_v40 = vpop.permute.xlu1 %486 }
 0x4c1   :  { %489 = vxpose.xlu1.b32.start.end [1/1] (short) (narrow) %v487_v40, 8 }
 0x4cd   :  { %v523_v41 = vpop.permute.xlu1 %522 }
 0x53d   :  { %v505_v42 = vpop.trf.xlu1 }
 0x53e   :  { %v528_v43 = vrot.slane %v505_v42, %v1316_v12 }
 0x540   :  { %v529_v44 = vadd.f32 %v528_v43, %v523_v41 }
 0x542   :  { %vm530_vm5 = vcmp.gt.f32.partialorder %v529_v44, 0.0  ;;  %v531_v45 = vmul.f32 0.2, %v529_v44 }
 0x544   :  { %v532_v46 = vsel %vm530_vm5, %v529_v44, %v531_v45 }
 0x545   :  { %v533_v47 = vsel %vm54_vm4, %v532_v46, -1e+30 }
 0x546   :  { %v534_v48 = vsel %vm55_vm1, %v533_v47, -inf }
 0x547   :  { %535 = vmax.xlane.f32.xlu0 %v534_v48 }
 0x5d0   :  { %v536_v49 = vpop.xlane.xlu0 %535 }
 0x5d1   :  { %v537_v50 = vsub.f32 %v533_v47, %v536_v49 }
 0x5d3   :  { %v538_v51 = vmul.f32 1.442695, %v537_v50 }
 0x5d5   :  { %1168 = vpow2.f32 %v538_v51 }
 0x5e2   :  { %v1169_v52 = vpop.eup %1168 }
 0x5e3   :  { %v540_v53 = vsel %vm55_vm1, %v1169_v52, 0.0 }
 0x5e4   :  { %541 = vadd.xlane.f32.xlu1 %v540_v53 }
 0x66d   :  { %v542_v54 = vpop.xlane.xlu1 %541 }
 0x66e   :  { %1170 = vrcp.f32 %v542_v54 }
 0x67b   :  { %v1171_v55 = vpop.eup %1170 }
 0x67c   :  { %v544_v56 = vmul.f32 %v1171_v55, %v1169_v52 }
 0x67e   :  { %1114 = vmatmul.mubr.msk.f32.vlgmr.msra.gmra.mxu1 %vm55_vm1, %v544_v56 }
 0x67f   :  { %1117 = vmatpush3.msra.mxu1 %v626_v57  ;;  %1124 = vmatprep.mubr.msk.f32.mxu1 %vm1268_vm0, %v1267_v0 }
 0x680   :  { %1118 = vmatprep.subr.mxu1 %v1267_v0 }
 0x681   :  { %1119 = vmatpush3.msra.mxu1 %v625_v58 }
 0x682   :  { %1120 = vmatprep.subr.mxu1 %v1267_v0 }
 0x683   :  { %1121 = vmatpush3.msra.mxu1 %v624_v59 }
 0x684   :  { %1122 = vmatprep.subr.mxu1 %v1267_v0 }
 0x685   :  { %1123 = vmatpush3.msra.mxu1 %v623_v60 }
 0x686   :  { %1143 = vmatprep.subr.mxu1 %v1267_v0 }
 0x73e   :  { %v618_v62 = vpop.f32.mrf.mxu1 }
 0x73f   :  { %v619_v63 = vadd.f32 %v1027_v61, %v618_v62 }
 0x740   :  { %v1115_v2 = vpop.f32.mrf.mxu1 }
 0x741   :  { %v622_v3 = vmax.f32 %v619_v63, 0.0 }
 0x743   :  { %1125 = vmatmul.mubr.msk.f32.vlgmr.msra.gmra.mxu1 %vm258_vm3, %v622_v3 }
 0x744   :  { %1151 = vmatprep.mubr.msk.f32.mxu1 %vm1268_vm0, %v1267_v0  ;;  %1144 = vmatpush3.msra.mxu1 %v924_v26 }
 0x745   :  { %1145 = vmatprep.subr.mxu1 %v1267_v0 }
 0x746   :  { %1146 = vmatpush3.msra.mxu1 %v923_v27 }
 0x747   :  { %1147 = vmatprep.subr.mxu1 %v1267_v0 }
 0x748   :  { %1148 = vmatpush3.msra.mxu1 %v922_v33 }
 0x749   :  { %1149 = vmatprep.subr.mxu1 %v1267_v0 }
 0x74a   :  { %1150 = vmatpush3.msra.mxu1 %v921_v34 }
 0x803   :  { %v697_v4 = vpop.f32.mrf.mxu1 }
 0x804   :  { %738 = vperm.xlu0 %1165, %v697_v4   ;;  %702 = vrot.lane.b32.xlu1 %v697_v4, %s1270_s0 }
 0x805   :  { %1128 = vmatpush3.msra.mxu0 %v697_v4  ;;  %v1126_v5 = vpop.f32.mrf.mxu1 }
 0x806   :  { %1132 = vmatprep.subr.mxu0 %v1267_v0 }
 0x876   :  { %v703_v6 = vpop.permute.xlu1 %702 }
 0x877   :  { %705 = vxpose.xlu1.b32.start.end [1/1] (short) (narrow) %v703_v6, 8 }
 0x87f   :  { %v739_v9 = vpop.permute.xlu0 %738 }
 0x8f3   :  { %v721_v7 = vpop.trf.xlu1 }
 0x8f4   :  { %v744_v8 = vrot.slane %v721_v7, %v1316_v12 }
 0x8f6   :  { %v745_v10 = vadd.f32 %v744_v8, %v739_v9 }
 0x8f8   :  { %vm746_vm6 = vcmp.gt.f32.partialorder %v745_v10, 0.0  ;;  %v747_v11 = vmul.f32 0.2, %v745_v10 }
 0x8fa   :  { %v748_v13 = vsel %vm746_vm6, %v745_v10, %v747_v11 }
 0x8fb   :  { %v749_v14 = vsel %vm54_vm4, %v748_v13, -1e+30 }
 0x8fc   :  { %v750_v15 = vsel %vm55_vm1, %v749_v14, -inf }
 0x8fd   :  { %751 = vmax.xlane.f32.xlu0 %v750_v15 }
 0x986   :  { %v752_v16 = vpop.xlane.xlu0 %751 }
 0x987   :  { %v753_v17 = vsub.f32 %v749_v14, %v752_v16 }
 0x989   :  { %v754_v18 = vmul.f32 1.442695, %v753_v17 }
 0x98b   :  { %1172 = vpow2.f32 %v754_v18 }
 0x998   :  { %v1173_v19 = vpop.eup %1172 }
 0x999   :  { %v756_v20 = vsel %vm55_vm1, %v1173_v19, 0.0 }
 0x99a   :  { %757 = vadd.xlane.f32.xlu1 %v756_v20 }
 0xa23   :  { %v758_v12 = vpop.xlane.xlu1 %757 }
 0xa24   :  { %1174 = vrcp.f32 %v758_v12 }
 0xa31   :  { %v1175_v21 = vpop.eup %1174 }
 0xa32   :  { %v760_v22 = vmul.f32 %v1175_v21, %v1173_v19 }
 0xa34   :  { %1130 = vmatmul.mubr.msk.f32.vlgmr.msra.gmra.mxu0 %vm55_vm1, %v760_v22 }
 0xa35   :  { %1133 = vmatpush3.msra.mxu0 %v842_v23  ;;  %1140 = vmatprep.mubr.msk.f32.mxu0 %vm1268_vm0, %v1267_v0 }
 0xa36   :  { %1134 = vmatprep.subr.mxu0 %v1267_v0 }
 0xa37   :  { %1135 = vmatpush3.msra.mxu0 %v841_v1 }
 0xa38   :  { %1136 = vmatprep.subr.mxu0 %v1267_v0 }
 0xa39   :  { %1137 = vmatpush3.msra.mxu0 %v840_v24 }
 0xa3a   :  { %1138 = vmatprep.subr.mxu0 %v1267_v0 }
 0xa3b   :  { %1139 = vmatpush3.msra.mxu0 %v839_v25 }
 0xaf4   :  { %v834_v29 = vpop.f32.mrf.mxu0 }
 0xaf5   :  { %v835_v30 = vadd.f32 %v1030_v28, %v834_v29 }
 0xaf6   :  { %v1131_v31 = vpop.f32.mrf.mxu0 }
 0xaf7   :  { %v838_v32 = vmax.f32 %v835_v30, 0.0 }
 0xaf9   :  { %1141 = vmatmul.mubr.msk.f32.vlgmr.msra.gmra.mxu0 %vm258_vm3, %v838_v32 }
 0xbb9   :  { %v917_v36 = vpop.f32.mrf.mxu0 }
 0xbba   :  { %v918_v37 = vadd.f32 %v1032_v35, %v917_v36 }
 0xbbb   :  { %v1142_v38 = vpop.f32.mrf.mxu0 }
 0xbbc   :  { %1152 = vmatmul.mubr.msk.f32.vlgmr.msra.gmra.mxu1 %vm258_vm3, %v918_v37 }
 0xc7c   :  { %v999_v40 = vpop.f32.mrf.mxu1 }
 0xc7d   :  { %v1000_v41 = vadd.f32 %v1034_v39, %v999_v40 }
 0xc7e   :  { %v1153_v42 = vpop.f32.mrf.mxu1 }
 0xc7f   :  { %1003 = vst.msk [vmem:[#allocation8] sm:$0xff] %vm55_vm1, %v1000_v41 }
 0xc80   :  { %1247 = shalt.err (!%p1244_p5)
}
 0xc81   :  { %1013 = dma.vmem_to_hbm [thread:$0]  %s1011_s28, 128, %s1384_s3, [#allocation4]  }
 0xc82   :  { %1260 = dma.done.wait [#allocation4], 128  }
 0xc83   :  { %1261 = vsyncadd [#allocation4], 4294967168 }
 0xc84   :  { %1017 = vsyncpa [#allocation3], 1 }
 0xc85   :  { %1018 = vsyncpa [#allocation6], 1 }
 0xc86   :  { %1019 = vsyncpa [#allocation4], 1 }

</bundles_post_ra>
